<compile_context>
chip_gen: v7x
topology: tpu7x:2x2x1
jax: 0.10.0
libtpu: 0.0.40
codegen_flags: <defaults>
</compile_context>

<pallas_src>
import functools
import math

import jax
import jax.numpy as jnp
from jax.experimental import pallas as pl
from jax.experimental.pallas import tpu as pltpu

# ---------------- synthetic Swin config (small) ----------------
PATCH = 4
IN_CHANS = 4
EMBED_DIM = 32
NUM_HEADS = 2
HEAD_DIM = EMBED_DIM // NUM_HEADS
MLP_DIM = 4 * EMBED_DIM
CPP = IN_CHANS * PATCH * PATCH          # flattened patch width (64)
L_TOKENS = 16                           # 4x4 token grid per image (H=W=16, P=4)
EPS = 1e-5

# ---- rows of the single packed (SLAB_ROWS, 128) parameter slab ----
R_PEW = 0                               # (CPP, D)   patch-embed weight
R_WQKV = R_PEW + CPP                    # (D, 3D)    fused QKV weight
R_WO = R_WQKV + EMBED_DIM               # (D, D)     attention output projection
R_W1 = R_WO + EMBED_DIM                 # (D, MLP)   MLP in
R_W2 = R_W1 + EMBED_DIM                 # (MLP, D)   MLP out
R_PEB = R_W2 + MLP_DIM                  # every row below is a (1, width) vector
R_PEG = R_PEB + 1
R_PEBE = R_PEG + 1
R_G1 = R_PEBE + 1
R_BE1 = R_G1 + 1
R_BQKV = R_BE1 + 1                      # fused (1, 3D) QKV bias (lane-0 aligned)
R_BO = R_BQKV + 1
R_G2 = R_BO + 1
R_BE2 = R_G2 + 1
R_MB1 = R_BE2 + 1
R_MB2 = R_MB1 + 1
R_GF = R_MB2 + 1
R_BEF = R_GF + 1
SLAB_ROWS = ((R_BEF + 1 + 7) // 8) * 8  # 304 (sublane-aligned)
SLAB_LANES = 128


def _layernorm(v, g, b):
    mu = jnp.mean(v, axis=-1, keepdims=True)
    var = jnp.mean(jnp.square(v - mu), axis=-1, keepdims=True)
    return (v - mu) * jax.lax.rsqrt(var + EPS) * g + b


def _softmax(s):
    m = jnp.max(s, axis=-1, keepdims=True)
    e = jnp.exp(s - m)
    # approx reciprocal runs on the EUP slot; ~1e-3 rel error vs exact softmax.
    return e * pl.reciprocal(jnp.sum(e, axis=-1, keepdims=True), approx=True)


# -------- fused kernel: patch-embed + Swin block (W-MSA + MLP) + final LN + pool --------
def swin_fused_kernel(patches_ref, relb_ref, slab_ref, o_ref):
    D = EMBED_DIM
    bt = o_ref.shape[0]                 # images in this batch tile
    m_rows = bt * L_TOKENS

    def mat(row, nrows, ncols):         # static sublane/lane slice of the slab
        return slab_ref[row:row + nrows, :ncols]

    def vec(row, width):                # (1, width) parameter vector, lane-0 aligned
        return slab_ref[row:row + 1, :width]

    # ---- 1) patch embedding (conv-as-matmul) + embedding LayerNorm ----
    tok = jnp.dot(patches_ref[...], mat(R_PEW, CPP, D),
                  preferred_element_type=jnp.float32) + vec(R_PEB, D)
    tok = _layernorm(tok, vec(R_PEG, D), vec(R_PEBE, D))          # (bt*L, D)

    # ---- 2) W-MSA (window == whole token grid of one image) ----
    h = _layernorm(tok, vec(R_G1, D), vec(R_BE1, D))
    # fused QKV: one (M,D)@(D,3D) MXU push + one fused bias row
    qkv = jnp.dot(h, mat(R_WQKV, D, 3 * D),
                  preferred_element_type=jnp.float32) + vec(R_BQKV, 3 * D)
    scale = 1.0 / math.sqrt(HEAD_DIM)
    heads = []
    for hd in range(NUM_HEADS):         # fully unrolled (2 heads)
        c = hd * HEAD_DIM
        q = qkv[:, c:c + HEAD_DIM].reshape(bt, L_TOKENS, HEAD_DIM)
        k = qkv[:, D + c:D + c + HEAD_DIM].reshape(bt, L_TOKENS, HEAD_DIM)
        v = qkv[:, 2 * D + c:2 * D + c + HEAD_DIM].reshape(bt, L_TOKENS, HEAD_DIM)
        # per-image (L,L) scores; relb stays (L,L) and broadcasts over the tile,
        # so images never attend to each other and no O(B^2) mask is materialized.
        s = jnp.einsum('bqd,bkd->bqk', q, k,
                       preferred_element_type=jnp.float32) * scale
        s = s + relb_ref[hd][None]
        p = _softmax(s)
        o = jnp.einsum('bqk,bkd->bqd', p, v,
                       preferred_element_type=jnp.float32)        # (bt, L, HD)
        heads.append(o.reshape(m_rows, HEAD_DIM))
    # heads already occupy adjacent lanes: concat is pure lane placement,
    # then a single K=32 output-projection matmul.
    attn = jnp.concatenate(heads, axis=-1)                        # (bt*L, D)
    attn = jnp.dot(attn, mat(R_WO, D, D),
                   preferred_element_type=jnp.float32) + vec(R_BO, D)
    x = tok + attn

    # ---- 3) MLP ----
    h2 = _layernorm(x, vec(R_G2, D), vec(R_BE2, D))
    m = jnp.dot(h2, mat(R_W1, D, MLP_DIM),
                preferred_element_type=jnp.float32) + vec(R_MB1, MLP_DIM)
    # TODO(synk): HF Swin uses exact (erf) GELU; tanh approximation kept here.
    m = jax.nn.gelu(m, approximate=True)
    m = jnp.dot(m, mat(R_W2, MLP_DIM, D),
                preferred_element_type=jnp.float32) + vec(R_MB2, D)
    x = x + m

    # ---- 4) final LayerNorm + per-image mean pool (AdaptiveAvgPool1d) ----
    hf = _layernorm(x, vec(R_GF, D), vec(R_BEF, D))               # (bt*L, D)
    o_ref[...] = jnp.mean(hf.reshape(bt, L_TOKENS, D), axis=1, keepdims=True)


# ---------------- wrapper: SwinFeatureExtractor.forward ----------------
def swin_feature_extractor(x, params, *, batch_tile=1):
    """x: (B, C, H, W) NCHW float32 -> features (B, EMBED_DIM) == pooler_output.

    batch_tile: images per grid step. Keep it large on v5e/v6e (amortize the
    ~0.35us/step overhead); smaller tiles keep per-step VMEM bounded and shard
    across v7x's two TensorCores via the "parallel" batch axis.
    """
    B, C, H, W = x.shape
    Hp, Wp = H // PATCH, W // PATCH
    L = Hp * Wp
    assert C * PATCH * PATCH == CPP and L == L_TOKENS
    assert B % batch_tile == 0

    # patch extraction glue (tiny, one-time): conv stride==kernel == flatten + matmul
    patches = x.reshape(B, C, Hp, PATCH, Wp, PATCH)
    patches = patches.transpose(0, 2, 4, 1, 3, 5).reshape(B * L, CPP)

    out = pl.pallas_call(
        swin_fused_kernel,
        out_shape=jax.ShapeDtypeStruct((B, 1, EMBED_DIM), jnp.float32),
        grid=(B // batch_tile,),
        in_specs=[
            # per-step patch tile -> double-buffered against previous tile's compute
            pl.BlockSpec((batch_tile * L, CPP), lambda b: (b, 0)),
            # relative position bias, resident across all grid steps
            pl.BlockSpec((NUM_HEADS, L_TOKENS, L_TOKENS), lambda b: (0, 0, 0)),
            # single packed parameter slab, resident across all grid steps
            pl.BlockSpec((SLAB_ROWS, SLAB_LANES), lambda b: (0, 0)),
        ],
        out_specs=pl.BlockSpec((batch_tile, 1, EMBED_DIM), lambda b: (b, 0, 0)),
        compiler_params=pltpu.CompilerParams(
            dimension_semantics=("parallel",),
            vmem_limit_bytes=32 * 1024 * 1024),
    )(patches, params["relb"], params["slab"])
    return out.reshape(B, EMBED_DIM)


# ---------------- parameter construction (synthetic, deterministic) ----------------
def init_params(key, in_chans):
    assert in_chans * PATCH * PATCH == CPP
    D = EMBED_DIM
    ks = jax.random.split(key, 20)
    n = lambda k, shape, s=0.02: s * jax.random.normal(k, shape, dtype=jnp.float32)

    slab = jnp.zeros((SLAB_ROWS, SLAB_LANES), jnp.float32)

    def put(s, row, a):
        a = jnp.asarray(a, jnp.float32)
        if a.ndim == 1:
            return s.at[row, :a.shape[0]].set(a)
        return s.at[row:row + a.shape[0], :a.shape[1]].set(a)

    slab = put(slab, R_PEW, n(ks[0], (CPP, D)))
    slab = put(slab, R_WQKV, n(ks[1], (D, 3 * D)))
    slab = put(slab, R_WO, n(ks[2], (D, D)))
    slab = put(slab, R_W1, n(ks[3], (D, MLP_DIM)))
    slab = put(slab, R_W2, n(ks[4], (MLP_DIM, D)))
    slab = put(slab, R_PEB, n(ks[5], (D,)))
    slab = put(slab, R_PEG, 1.0 + n(ks[6], (D,)))
    slab = put(slab, R_PEBE, n(ks[7], (D,)))
    slab = put(slab, R_G1, 1.0 + n(ks[8], (D,)))
    slab = put(slab, R_BE1, n(ks[9], (D,)))
    slab = put(slab, R_BQKV, n(ks[10], (3 * D,)))
    slab = put(slab, R_BO, n(ks[11], (D,)))
    slab = put(slab, R_G2, 1.0 + n(ks[12], (D,)))
    slab = put(slab, R_BE2, n(ks[13], (D,)))
    slab = put(slab, R_MB1, n(ks[14], (MLP_DIM,)))
    slab = put(slab, R_MB2, n(ks[15], (D,)))
    slab = put(slab, R_GF, 1.0 + n(ks[16], (D,)))
    slab = put(slab, R_BEF, n(ks[17], (D,)))

    relb = n(ks[18], (NUM_HEADS, L_TOKENS, L_TOKENS), s=0.1)
    return {"slab": slab, "relb": relb}


# ---------------- pure-JAX reference (same synthetic weights / layout) ----------------
def swin_reference(x, params):
    B, C, H, W = x.shape
    Hp, Wp = H // PATCH, W // PATCH
    L = Hp * Wp
    D = EMBED_DIM
    hi = jax.lax.Precision.HIGHEST
    slab, relb = params["slab"], params["relb"]

    patches = x.reshape(B, C, Hp, PATCH, Wp, PATCH).transpose(0, 2, 4, 1, 3, 5)
    patches = patches.reshape(B, L, CPP)

    def ln(v, gr, br):
        mu = v.mean(-1, keepdims=True)
        var = jnp.square(v - mu).mean(-1, keepdims=True)
        return (v - mu) * jax.lax.rsqrt(var + EPS) * slab[gr, :D] + slab[br, :D]

    tok = jnp.dot(patches, slab[R_PEW:R_PEW + CPP, :D], precision=hi) + slab[R_PEB, :D]
    tok = ln(tok, R_PEG, R_PEBE)

    h = ln(tok, R_G1, R_BE1)
    qkv = jnp.dot(h, slab[R_WQKV:R_WQKV + D, :3 * D], precision=hi) + slab[R_BQKV, :3 * D]
    q, k, v = jnp.split(qkv, 3, axis=-1)
    split_heads = lambda t: t.reshape(B, L, NUM_HEADS, HEAD_DIM).transpose(0, 2, 1, 3)
    q, k, v = split_heads(q), split_heads(k), split_heads(v)
    s = jnp.einsum('bhqd,bhkd->bhqk', q, k, precision=hi) / math.sqrt(HEAD_DIM)
    s = s + relb[None]
    p = jax.nn.softmax(s, axis=-1)
    o = jnp.einsum('bhqk,bhkd->bhqd', p, v, precision=hi)
    o = o.transpose(0, 2, 1, 3).reshape(B, L, D)
    attn = jnp.dot(o, slab[R_WO:R_WO + D, :D], precision=hi) + slab[R_BO, :D]
    xb = tok + attn

    h2 = ln(xb, R_G2, R_BE2)
    m = jnp.dot(h2, slab[R_W1:R_W1 + D, :MLP_DIM], precision=hi) + slab[R_MB1, :MLP_DIM]
    m = jax.nn.gelu(m, approximate=True)
    m = jnp.dot(m, slab[R_W2:R_W2 + MLP_DIM, :D], precision=hi) + slab[R_MB2, :D]
    xb = xb + m

    hf = ln(xb, R_GF, R_BEF)
    return hf.mean(axis=1)


if __name__ == "__main__":
    B, C, H, W = 2, IN_CHANS, 16, 16
    key = jax.random.PRNGKey(0)
    kx, kp = jax.random.split(key)

    x = jax.random.normal(kx, (B, C, H, W), dtype=jnp.float32)
    params = init_params(kp, C)

    fn = jax.jit(functools.partial(swin_feature_extractor, batch_tile=1))
    feats = jax.block_until_ready(fn(x, params))

    assert feats.shape == (B, EMBED_DIM), feats.shape
    assert bool(jnp.all(jnp.isfinite(feats)))

    ref = swin_reference(x, params)
    err = float(jnp.max(jnp.abs(feats - ref)))
    assert err < 5e-2, f"max_abs_err={err}"

    print("KERNEL_OK")
</pallas_src>

<mosaic_0001>
module attributes {stable_mosaic.version = 11 : i64} {
  func.func @swin_fused_kernel(%arg0: i32, %arg1: memref<16x64xf32, #tpu.memory_space<vmem>>, %arg2: memref<2x16x16xf32, #tpu.memory_space<vmem>>, %arg3: memref<304x128xf32, #tpu.memory_space<vmem>>, %arg4: memref<1x1x32xf32, #tpu.memory_space<vmem>>) attributes {dimension_semantics = [#tpu.dimension_semantics<parallel>], iteration_bounds = array<i64: 2>, scalar_prefetch = 0 : i64, scratch_operands = 0 : i64, tpu.core_type = #tpu.core_type<tc>, window_params = [{transform_indices = @transform_0, window_bounds = array<i64: 16, 64>}, {pipeline_mode = #tpu.pipeline_mode<synchronous>, transform_indices = @transform_1, window_bounds = array<i64: 2, 16, 16>}, {pipeline_mode = #tpu.pipeline_mode<synchronous>, transform_indices = @transform_2, window_bounds = array<i64: 304, 128>}, {transform_indices = @transform_3, window_bounds = array<i64: 1, 1, 32>}]} {
    %c0 = arith.constant 0 : index
    %c0_0 = arith.constant 0 : index
    %0 = vector.load %arg1[%c0, %c0_0] : memref<16x64xf32, #tpu.memory_space<vmem>>, vector<16x64xf32>
    %c0_1 = arith.constant 0 : index
    %c0_2 = arith.constant 0 : index
    %1 = vector.load %arg3[%c0_1, %c0_2] : memref<304x128xf32, #tpu.memory_space<vmem>>, vector<64x32xf32>
    %cst = arith.constant dense<0.000000e+00> : vector<16x32xf32>
    %2 = tpu.matmul %0, %1, %cst {dimension_numbers = #tpu.dot_dimension_numbers<[1], [0], [0], [1], [0, 0, 1, 1], [], []>} : vector<16x64xf32>, vector<64x32xf32>, vector<16x32xf32> -> vector<16x32xf32>
    %c288 = arith.constant 288 : index
    %c0_3 = arith.constant 0 : index
    %3 = vector.load %arg3[%c288, %c0_3] : memref<304x128xf32, #tpu.memory_space<vmem>>, vector<1x32xf32>
    %4 = vector.broadcast %3 : vector<1x32xf32> to vector<16x32xf32>
    %5 = arith.addf %2, %4 : vector<16x32xf32>
    %c289 = arith.constant 289 : index
    %c0_4 = arith.constant 0 : index
    %6 = vector.load %arg3[%c289, %c0_4] : memref<304x128xf32, #tpu.memory_space<vmem>>, vector<1x32xf32>
    %c290 = arith.constant 290 : index
    %c0_5 = arith.constant 0 : index
    %7 = vector.load %arg3[%c290, %c0_5] : memref<304x128xf32, #tpu.memory_space<vmem>>, vector<1x32xf32>
    %cst_6 = arith.constant dense<0.000000e+00> : vector<16xf32>
    %8 = vector.multi_reduction <add>, %5, %cst_6 [1] : vector<16x32xf32> to vector<16xf32>
    %9 = vector.shape_cast %8 : vector<16xf32> to vector<16x1xf32>
    %cst_7 = arith.constant 3.200000e+01 : f32
    %10 = vector.broadcast %cst_7 : f32 to vector<16x1xf32>
    %11 = arith.divf %9, %10 : vector<16x1xf32>
    %12 = vector.broadcast %11 : vector<16x1xf32> to vector<16x32xf32>
    %13 = arith.subf %5, %12 : vector<16x32xf32>
    %14 = arith.mulf %13, %13 : vector<16x32xf32>
    %cst_8 = arith.constant dense<0.000000e+00> : vector<16xf32>
    %15 = vector.multi_reduction <add>, %14, %cst_8 [1] : vector<16x32xf32> to vector<16xf32>
    %16 = vector.shape_cast %15 : vector<16xf32> to vector<16x1xf32>
    %cst_9 = arith.constant 3.200000e+01 : f32
    %17 = vector.broadcast %cst_9 : f32 to vector<16x1xf32>
    %18 = arith.divf %16, %17 : vector<16x1xf32>
    %19 = vector.broadcast %11 : vector<16x1xf32> to vector<16x32xf32>
    %20 = arith.subf %5, %19 : vector<16x32xf32>
    %cst_10 = arith.constant 9.99999974E-6 : f32
    %21 = vector.broadcast %cst_10 : f32 to vector<16x1xf32>
    %22 = arith.addf %18, %21 : vector<16x1xf32>
    %23 = math.rsqrt %22 : vector<16x1xf32>
    %24 = vector.broadcast %23 : vector<16x1xf32> to vector<16x32xf32>
    %25 = arith.mulf %20, %24 : vector<16x32xf32>
    %26 = vector.broadcast %6 : vector<1x32xf32> to vector<16x32xf32>
    %27 = arith.mulf %25, %26 : vector<16x32xf32>
    %28 = vector.broadcast %7 : vector<1x32xf32> to vector<16x32xf32>
    %29 = arith.addf %27, %28 : vector<16x32xf32>
    %c291 = arith.constant 291 : index
    %c0_11 = arith.constant 0 : index
    %30 = vector.load %arg3[%c291, %c0_11] : memref<304x128xf32, #tpu.memory_space<vmem>>, vector<1x32xf32>
    %c292 = arith.constant 292 : index
    %c0_12 = arith.constant 0 : index
    %31 = vector.load %arg3[%c292, %c0_12] : memref<304x128xf32, #tpu.memory_space<vmem>>, vector<1x32xf32>
    %cst_13 = arith.constant dense<0.000000e+00> : vector<16xf32>
    %32 = vector.multi_reduction <add>, %29, %cst_13 [1] : vector<16x32xf32> to vector<16xf32>
    %33 = vector.shape_cast %32 : vector<16xf32> to vector<16x1xf32>
    %cst_14 = arith.constant 3.200000e+01 : f32
    %34 = vector.broadcast %cst_14 : f32 to vector<16x1xf32>
    %35 = arith.divf %33, %34 : vector<16x1xf32>
    %36 = vector.broadcast %35 : vector<16x1xf32> to vector<16x32xf32>
    %37 = arith.subf %29, %36 : vector<16x32xf32>
    %38 = arith.mulf %37, %37 : vector<16x32xf32>
    %cst_15 = arith.constant dense<0.000000e+00> : vector<16xf32>
    %39 = vector.multi_reduction <add>, %38, %cst_15 [1] : vector<16x32xf32> to vector<16xf32>
    %40 = vector.shape_cast %39 : vector<16xf32> to vector<16x1xf32>
    %cst_16 = arith.constant 3.200000e+01 : f32
    %41 = vector.broadcast %cst_16 : f32 to vector<16x1xf32>
    %42 = arith.divf %40, %41 : vector<16x1xf32>
    %43 = vector.broadcast %35 : vector<16x1xf32> to vector<16x32xf32>
    %44 = arith.subf %29, %43 : vector<16x32xf32>
    %cst_17 = arith.constant 9.99999974E-6 : f32
    %45 = vector.broadcast %cst_17 : f32 to vector<16x1xf32>
    %46 = arith.addf %42, %45 : vector<16x1xf32>
    %47 = math.rsqrt %46 : vector<16x1xf32>
    %48 = vector.broadcast %47 : vector<16x1xf32> to vector<16x32xf32>
    %49 = arith.mulf %44, %48 : vector<16x32xf32>
    %50 = vector.broadcast %30 : vector<1x32xf32> to vector<16x32xf32>
    %51 = arith.mulf %49, %50 : vector<16x32xf32>
    %52 = vector.broadcast %31 : vector<1x32xf32> to vector<16x32xf32>
    %53 = arith.addf %51, %52 : vector<16x32xf32>
    %c64 = arith.constant 64 : index
    %c0_18 = arith.constant 0 : index
    %54 = vector.load %arg3[%c64, %c0_18] : memref<304x128xf32, #tpu.memory_space<vmem>>, vector<32x96xf32>
    %cst_19 = arith.constant dense<0.000000e+00> : vector<16x96xf32>
    %55 = tpu.matmul %53, %54, %cst_19 {dimension_numbers = #tpu.dot_dimension_numbers<[1], [0], [0], [1], [0, 0, 1, 1], [], []>} : vector<16x32xf32>, vector<32x96xf32>, vector<16x96xf32> -> vector<16x96xf32>
    %c293 = arith.constant 293 : index
    %c0_20 = arith.constant 0 : index
    %56 = vector.load %arg3[%c293, %c0_20] : memref<304x128xf32, #tpu.memory_space<vmem>>, vector<1x96xf32>
    %57 = vector.broadcast %56 : vector<1x96xf32> to vector<16x96xf32>
    %58 = arith.addf %55, %57 : vector<16x96xf32>
    %59 = vector.extract_strided_slice %58 {offsets = [0, 0], sizes = [16, 16], strides = [1, 1]} : vector<16x96xf32> to vector<16x16xf32>
    %60 = vector.shape_cast %59 : vector<16x16xf32> to vector<1x16x16xf32>
    %61 = vector.extract_strided_slice %58 {offsets = [0, 32], sizes = [16, 16], strides = [1, 1]} : vector<16x96xf32> to vector<16x16xf32>
    %62 = vector.shape_cast %61 : vector<16x16xf32> to vector<1x16x16xf32>
    %63 = vector.extract_strided_slice %58 {offsets = [0, 64], sizes = [16, 16], strides = [1, 1]} : vector<16x96xf32> to vector<16x16xf32>
    %64 = vector.shape_cast %63 : vector<16x16xf32> to vector<1x16x16xf32>
    "tpu.trace_start"() <{level = 10 : i32, message = "bqd,bkd->bqk"}> : () -> ()
    %cst_21 = arith.constant dense<0.000000e+00> : vector<1x16x16xf32>
    %65 = tpu.matmul %60, %62, %cst_21 {dimension_numbers = #tpu.dot_dimension_numbers<[2], [2], [1], [1], [0, 0, 0, 1, 1, 1], [0], [0]>} : vector<1x16x16xf32>, vector<1x16x16xf32>, vector<1x16x16xf32> -> vector<1x16x16xf32>
    "tpu.trace_stop"() : () -> ()
    %cst_22 = arith.constant 2.500000e-01 : f32
    %66 = vector.broadcast %cst_22 : f32 to vector<1x16x16xf32>
    %67 = arith.mulf %65, %66 : vector<1x16x16xf32>
    %c0_23 = arith.constant 0 : index
    %c0_24 = arith.constant 0 : index
    %c0_25 = arith.constant 0 : index
    %68 = vector.load %arg2[%c0_23, %c0_24, %c0_25] : memref<2x16x16xf32, #tpu.memory_space<vmem>>, vector<1x16x16xf32>
    %69 = vector.shape_cast %68 : vector<1x16x16xf32> to vector<16x16xf32>
    %70 = vector.shape_cast %69 : vector<16x16xf32> to vector<1x16x16xf32>
    %71 = arith.addf %67, %70 : vector<1x16x16xf32>
    %cst_26 = arith.constant dense<0xFF800000> : vector<1x16xf32>
    %72 = vector.multi_reduction <maximumf>, %71, %cst_26 [2] : vector<1x16x16xf32> to vector<1x16xf32>
    %73 = vector.shape_cast %72 : vector<1x16xf32> to vector<1x16x1xf32>
    %74 = vector.broadcast %73 : vector<1x16x1xf32> to vector<1x16x16xf32>
    %75 = arith.subf %71, %74 : vector<1x16x16xf32>
    %76 = math.exp %75 : vector<1x16x16xf32>
    %cst_27 = arith.constant dense<0.000000e+00> : vector<1x16xf32>
    %77 = vector.multi_reduction <add>, %76, %cst_27 [2] : vector<1x16x16xf32> to vector<1x16xf32>
    %78 = vector.shape_cast %77 : vector<1x16xf32> to vector<1x16x1xf32>
    %79 = tpu.reciprocal %78 {approx = true} : vector<1x16x1xf32> -> vector<1x16x1xf32>
    %80 = vector.broadcast %79 : vector<1x16x1xf32> to vector<1x16x16xf32>
    %81 = arith.mulf %76, %80 : vector<1x16x16xf32>
    "tpu.trace_start"() <{level = 10 : i32, message = "bqk,bkd->bqd"}> : () -> ()
    %cst_28 = arith.constant dense<0.000000e+00> : vector<1x16x16xf32>
    %82 = tpu.matmul %81, %64, %cst_28 {dimension_numbers = #tpu.dot_dimension_numbers<[2], [1], [1], [2], [0, 0, 0, 1, 1, 2], [0], [0]>} : vector<1x16x16xf32>, vector<1x16x16xf32>, vector<1x16x16xf32> -> vector<1x16x16xf32>
    "tpu.trace_stop"() : () -> ()
    %83 = vector.shape_cast %82 : vector<1x16x16xf32> to vector<16x16xf32>
    %84 = vector.extract_strided_slice %58 {offsets = [0, 16], sizes = [16, 16], strides = [1, 1]} : vector<16x96xf32> to vector<16x16xf32>
    %85 = vector.shape_cast %84 : vector<16x16xf32> to vector<1x16x16xf32>
    %86 = vector.extract_strided_slice %58 {offsets = [0, 48], sizes = [16, 16], strides = [1, 1]} : vector<16x96xf32> to vector<16x16xf32>
    %87 = vector.shape_cast %86 : vector<16x16xf32> to vector<1x16x16xf32>
    %88 = vector.extract_strided_slice %58 {offsets = [0, 80], sizes = [16, 16], strides = [1, 1]} : vector<16x96xf32> to vector<16x16xf32>
    %89 = vector.shape_cast %88 : vector<16x16xf32> to vector<1x16x16xf32>
    "tpu.trace_start"() <{level = 10 : i32, message = "bqd,bkd->bqk"}> : () -> ()
    %cst_29 = arith.constant dense<0.000000e+00> : vector<1x16x16xf32>
    %90 = tpu.matmul %85, %87, %cst_29 {dimension_numbers = #tpu.dot_dimension_numbers<[2], [2], [1], [1], [0, 0, 0, 1, 1, 1], [0], [0]>} : vector<1x16x16xf32>, vector<1x16x16xf32>, vector<1x16x16xf32> -> vector<1x16x16xf32>
    "tpu.trace_stop"() : () -> ()
    %cst_30 = arith.constant 2.500000e-01 : f32
    %91 = vector.broadcast %cst_30 : f32 to vector<1x16x16xf32>
    %92 = arith.mulf %90, %91 : vector<1x16x16xf32>
    %c1 = arith.constant 1 : index
    %c0_31 = arith.constant 0 : index
    %c0_32 = arith.constant 0 : index
    %93 = vector.load %arg2[%c1, %c0_31, %c0_32] : memref<2x16x16xf32, #tpu.memory_space<vmem>>, vector<1x16x16xf32>
    %94 = vector.shape_cast %93 : vector<1x16x16xf32> to vector<16x16xf32>
    %95 = vector.shape_cast %94 : vector<16x16xf32> to vector<1x16x16xf32>
    %96 = arith.addf %92, %95 : vector<1x16x16xf32>
    %cst_33 = arith.constant dense<0xFF800000> : vector<1x16xf32>
    %97 = vector.multi_reduction <maximumf>, %96, %cst_33 [2] : vector<1x16x16xf32> to vector<1x16xf32>
    %98 = vector.shape_cast %97 : vector<1x16xf32> to vector<1x16x1xf32>
    %99 = vector.broadcast %98 : vector<1x16x1xf32> to vector<1x16x16xf32>
    %100 = arith.subf %96, %99 : vector<1x16x16xf32>
    %101 = math.exp %100 : vector<1x16x16xf32>
    %cst_34 = arith.constant dense<0.000000e+00> : vector<1x16xf32>
    %102 = vector.multi_reduction <add>, %101, %cst_34 [2] : vector<1x16x16xf32> to vector<1x16xf32>
    %103 = vector.shape_cast %102 : vector<1x16xf32> to vector<1x16x1xf32>
    %104 = tpu.reciprocal %103 {approx = true} : vector<1x16x1xf32> -> vector<1x16x1xf32>
    %105 = vector.broadcast %104 : vector<1x16x1xf32> to vector<1x16x16xf32>
    %106 = arith.mulf %101, %105 : vector<1x16x16xf32>
    "tpu.trace_start"() <{level = 10 : i32, message = "bqk,bkd->bqd"}> : () -> ()
    %cst_35 = arith.constant dense<0.000000e+00> : vector<1x16x16xf32>
    %107 = tpu.matmul %106, %89, %cst_35 {dimension_numbers = #tpu.dot_dimension_numbers<[2], [1], [1], [2], [0, 0, 0, 1, 1, 2], [0], [0]>} : vector<1x16x16xf32>, vector<1x16x16xf32>, vector<1x16x16xf32> -> vector<1x16x16xf32>
    "tpu.trace_stop"() : () -> ()
    %108 = vector.shape_cast %107 : vector<1x16x16xf32> to vector<16x16xf32>
    %109 = tpu.concatenate %83, %108 in 1 : vector<16x16xf32>, vector<16x16xf32> -> vector<16x32xf32>
    %c96 = arith.constant 96 : index
    %c0_36 = arith.constant 0 : index
    %110 = vector.load %arg3[%c96, %c0_36] : memref<304x128xf32, #tpu.memory_space<vmem>>, vector<32x32xf32>
    %cst_37 = arith.constant dense<0.000000e+00> : vector<16x32xf32>
    %111 = tpu.matmul %109, %110, %cst_37 {dimension_numbers = #tpu.dot_dimension_numbers<[1], [0], [0], [1], [0, 0, 1, 1], [], []>} : vector<16x32xf32>, vector<32x32xf32>, vector<16x32xf32> -> vector<16x32xf32>
    %c294 = arith.constant 294 : index
    %c0_38 = arith.constant 0 : index
    %112 = vector.load %arg3[%c294, %c0_38] : memref<304x128xf32, #tpu.memory_space<vmem>>, vector<1x32xf32>
    %113 = vector.broadcast %112 : vector<1x32xf32> to vector<16x32xf32>
    %114 = arith.addf %111, %113 : vector<16x32xf32>
    %115 = arith.addf %29, %114 : vector<16x32xf32>
    %c295 = arith.constant 295 : index
    %c0_39 = arith.constant 0 : index
    %116 = vector.load %arg3[%c295, %c0_39] : memref<304x128xf32, #tpu.memory_space<vmem>>, vector<1x32xf32>
    %c296 = arith.constant 296 : index
    %c0_40 = arith.constant 0 : index
    %117 = vector.load %arg3[%c296, %c0_40] : memref<304x128xf32, #tpu.memory_space<vmem>>, vector<1x32xf32>
    %cst_41 = arith.constant dense<0.000000e+00> : vector<16xf32>
    %118 = vector.multi_reduction <add>, %115, %cst_41 [1] : vector<16x32xf32> to vector<16xf32>
    %119 = vector.shape_cast %118 : vector<16xf32> to vector<16x1xf32>
    %cst_42 = arith.constant 3.200000e+01 : f32
    %120 = vector.broadcast %cst_42 : f32 to vector<16x1xf32>
    %121 = arith.divf %119, %120 : vector<16x1xf32>
    %122 = vector.broadcast %121 : vector<16x1xf32> to vector<16x32xf32>
    %123 = arith.subf %115, %122 : vector<16x32xf32>
    %124 = arith.mulf %123, %123 : vector<16x32xf32>
    %cst_43 = arith.constant dense<0.000000e+00> : vector<16xf32>
    %125 = vector.multi_reduction <add>, %124, %cst_43 [1] : vector<16x32xf32> to vector<16xf32>
    %126 = vector.shape_cast %125 : vector<16xf32> to vector<16x1xf32>
    %cst_44 = arith.constant 3.200000e+01 : f32
    %127 = vector.broadcast %cst_44 : f32 to vector<16x1xf32>
    %128 = arith.divf %126, %127 : vector<16x1xf32>
    %129 = vector.broadcast %121 : vector<16x1xf32> to vector<16x32xf32>
    %130 = arith.subf %115, %129 : vector<16x32xf32>
    %cst_45 = arith.constant 9.99999974E-6 : f32
    %131 = vector.broadcast %cst_45 : f32 to vector<16x1xf32>
    %132 = arith.addf %128, %131 : vector<16x1xf32>
    %133 = math.rsqrt %132 : vector<16x1xf32>
    %134 = vector.broadcast %133 : vector<16x1xf32> to vector<16x32xf32>
    %135 = arith.mulf %130, %134 : vector<16x32xf32>
    %136 = vector.broadcast %116 : vector<1x32xf32> to vector<16x32xf32>
    %137 = arith.mulf %135, %136 : vector<16x32xf32>
    %138 = vector.broadcast %117 : vector<1x32xf32> to vector<16x32xf32>
    %139 = arith.addf %137, %138 : vector<16x32xf32>
    %c128 = arith.constant 128 : index
    %c0_46 = arith.constant 0 : index
    %140 = vector.load %arg3[%c128, %c0_46] : memref<304x128xf32, #tpu.memory_space<vmem>>, vector<32x128xf32>
    %cst_47 = arith.constant dense<0.000000e+00> : vector<16x128xf32>
    %141 = tpu.matmul %139, %140, %cst_47 {dimension_numbers = #tpu.dot_dimension_numbers<[1], [0], [0], [1], [0, 0, 1, 1], [], []>} : vector<16x32xf32>, vector<32x128xf32>, vector<16x128xf32> -> vector<16x128xf32>
    %c297 = arith.constant 297 : index
    %c0_48 = arith.constant 0 : index
    %142 = vector.load %arg3[%c297, %c0_48] : memref<304x128xf32, #tpu.memory_space<vmem>>, vector<1x128xf32>
    %143 = vector.broadcast %142 : vector<1x128xf32> to vector<16x128xf32>
    %144 = arith.addf %141, %143 : vector<16x128xf32>
    %145 = arith.mulf %144, %144 : vector<16x128xf32>
    %146 = arith.mulf %144, %145 : vector<16x128xf32>
    %cst_49 = arith.constant 4.471500e-02 : f32
    %147 = vector.broadcast %cst_49 : f32 to vector<16x128xf32>
    %148 = arith.mulf %147, %146 : vector<16x128xf32>
    %149 = arith.addf %144, %148 : vector<16x128xf32>
    %cst_50 = arith.constant 0.797884583 : f32
    %150 = vector.broadcast %cst_50 : f32 to vector<16x128xf32>
    %151 = arith.mulf %150, %149 : vector<16x128xf32>
    %152 = math.tanh %151 : vector<16x128xf32>
    %cst_51 = arith.constant 1.000000e+00 : f32
    %153 = vector.broadcast %cst_51 : f32 to vector<16x128xf32>
    %154 = arith.addf %153, %152 : vector<16x128xf32>
    %cst_52 = arith.constant 5.000000e-01 : f32
    %155 = vector.broadcast %cst_52 : f32 to vector<16x128xf32>
    %156 = arith.mulf %155, %154 : vector<16x128xf32>
    %157 = arith.mulf %144, %156 : vector<16x128xf32>
    %c160 = arith.constant 160 : index
    %c0_53 = arith.constant 0 : index
    %158 = vector.load %arg3[%c160, %c0_53] : memref<304x128xf32, #tpu.memory_space<vmem>>, vector<128x32xf32>
    %cst_54 = arith.constant dense<0.000000e+00> : vector<16x32xf32>
    %159 = tpu.matmul %157, %158, %cst_54 {dimension_numbers = #tpu.dot_dimension_numbers<[1], [0], [0], [1], [0, 0, 1, 1], [], []>} : vector<16x128xf32>, vector<128x32xf32>, vector<16x32xf32> -> vector<16x32xf32>
    %c298 = arith.constant 298 : index
    %c0_55 = arith.constant 0 : index
    %160 = vector.load %arg3[%c298, %c0_55] : memref<304x128xf32, #tpu.memory_space<vmem>>, vector<1x32xf32>
    %161 = vector.broadcast %160 : vector<1x32xf32> to vector<16x32xf32>
    %162 = arith.addf %159, %161 : vector<16x32xf32>
    %163 = arith.addf %115, %162 : vector<16x32xf32>
    %c299 = arith.constant 299 : index
    %c0_56 = arith.constant 0 : index
    %164 = vector.load %arg3[%c299, %c0_56] : memref<304x128xf32, #tpu.memory_space<vmem>>, vector<1x32xf32>
    %c300 = arith.constant 300 : index
    %c0_57 = arith.constant 0 : index
    %165 = vector.load %arg3[%c300, %c0_57] : memref<304x128xf32, #tpu.memory_space<vmem>>, vector<1x32xf32>
    %cst_58 = arith.constant dense<0.000000e+00> : vector<16xf32>
    %166 = vector.multi_reduction <add>, %163, %cst_58 [1] : vector<16x32xf32> to vector<16xf32>
    %167 = vector.shape_cast %166 : vector<16xf32> to vector<16x1xf32>
    %cst_59 = arith.constant 3.200000e+01 : f32
    %168 = vector.broadcast %cst_59 : f32 to vector<16x1xf32>
    %169 = arith.divf %167, %168 : vector<16x1xf32>
    %170 = vector.broadcast %169 : vector<16x1xf32> to vector<16x32xf32>
    %171 = arith.subf %163, %170 : vector<16x32xf32>
    %172 = arith.mulf %171, %171 : vector<16x32xf32>
    %cst_60 = arith.constant dense<0.000000e+00> : vector<16xf32>
    %173 = vector.multi_reduction <add>, %172, %cst_60 [1] : vector<16x32xf32> to vector<16xf32>
    %174 = vector.shape_cast %173 : vector<16xf32> to vector<16x1xf32>
    %cst_61 = arith.constant 3.200000e+01 : f32
    %175 = vector.broadcast %cst_61 : f32 to vector<16x1xf32>
    %176 = arith.divf %174, %175 : vector<16x1xf32>
    %177 = vector.broadcast %169 : vector<16x1xf32> to vector<16x32xf32>
    %178 = arith.subf %163, %177 : vector<16x32xf32>
    %cst_62 = arith.constant 9.99999974E-6 : f32
    %179 = vector.broadcast %cst_62 : f32 to vector<16x1xf32>
    %180 = arith.addf %176, %179 : vector<16x1xf32>
    %181 = math.rsqrt %180 : vector<16x1xf32>
    %182 = vector.broadcast %181 : vector<16x1xf32> to vector<16x32xf32>
    %183 = arith.mulf %178, %182 : vector<16x32xf32>
    %184 = vector.broadcast %164 : vector<1x32xf32> to vector<16x32xf32>
    %185 = arith.mulf %183, %184 : vector<16x32xf32>
    %186 = vector.broadcast %165 : vector<1x32xf32> to vector<16x32xf32>
    %187 = arith.addf %185, %186 : vector<16x32xf32>
    %188 = vector.shape_cast %187 : vector<16x32xf32> to vector<1x16x32xf32>
    %cst_63 = arith.constant dense<0.000000e+00> : vector<1x32xf32>
    %189 = vector.multi_reduction <add>, %188, %cst_63 [1] : vector<1x16x32xf32> to vector<1x32xf32>
    %190 = vector.shape_cast %189 : vector<1x32xf32> to vector<1x1x32xf32>
    %cst_64 = arith.constant 1.600000e+01 : f32
    %191 = vector.broadcast %cst_64 : f32 to vector<1x1x32xf32>
    %192 = arith.divf %190, %191 : vector<1x1x32xf32>
    %c0_65 = arith.constant 0 : index
    %c0_66 = arith.constant 0 : index
    %c0_67 = arith.constant 0 : index
    %193 = vector.load %arg4[%c0_65, %c0_66, %c0_67] : memref<1x1x32xf32, #tpu.memory_space<vmem>>, vector<1x1x32xf32>
    tpu.vector_store %arg4[%c0_65, %c0_66, %c0_67], %192 {strides = array<i32>} : memref<1x1x32xf32, #tpu.memory_space<vmem>>, vector<1x1x32xf32>,
    return
  }
  func.func @transform_0(%arg0: i32) -> (i32, i32) {
    %c0_i32 = arith.constant 0 : i32
    %c0_i32_0 = arith.constant 0 : i32
    return %arg0, %c0_i32 : i32, i32
  }
  func.func @transform_1(%arg0: i32) -> (i32, i32, i32) {
    %c0_i32 = arith.constant 0 : i32
    %c0_i32_0 = arith.constant 0 : i32
    %c0_i32_1 = arith.constant 0 : i32
    %c0_i32_2 = arith.constant 0 : i32
    return %c0_i32, %c0_i32_0, %c0_i32_1 : i32, i32, i32
  }
  func.func @transform_2(%arg0: i32) -> (i32, i32) {
    %c0_i32 = arith.constant 0 : i32
    %c0_i32_0 = arith.constant 0 : i32
    %c0_i32_1 = arith.constant 0 : i32
    return %c0_i32, %c0_i32_0 : i32, i32
  }
  func.func @transform_3(%arg0: i32) -> (i32, i32, i32) {
    %c0_i32 = arith.constant 0 : i32
    %c0_i32_0 = arith.constant 0 : i32
    %c0_i32_1 = arith.constant 0 : i32
    return %arg0, %c0_i32, %c0_i32_0 : i32, i32, i32
  }
}

</mosaic_0001>

<bundles_post_ra>
// kernel: swin_feature_extractor.1
= control target key start
LH: loop header
LB: loop body
LE: loop exit
PB: predicated region body
PF: predicated region fallthrough
CT: control target
= control target key end

     0   :  { %8 = vsyncpa [#allocation3], 0  ;;  %s2153_s0 = inlined_call_operand.vmem [shape: f32[32,64], index: 0, kind: input, shape index: {}]   ;;  %s2154_s1 = inlined_call_operand.vmem [shape: f32[2,16,16], index: 1, kind: input, shape index: {}]   ;;  %s2155_s2 = inlined_call_operand.vmem [shape: f32[304,128], index: 2, kind: input, shape index: {}]   ;;  %s2156_s3 = inlined_call_operand.hbm [shape: f32[2,1,32], index: 3, kind: output, shape index: {}]  }
   0x1   :  { %10 = vsyncpa [#allocation3 + $0x1], 0  ;;  %s1825_s12 = smov 0   ;;  %s1827_s13 = smov 0  }
   0x2   :  { %s1829_s14 = smov 0   ;;  %s1831_s15 = smov 0  }
   0x3 LB: > { %s1846_s16 = sadd.s32 4294967295, %s1796_s15   ;;  %s1320_s17 = sadd.s32 4294967294, %s1796_s15   ;;  %s1796_s15 = sphi %s1831_s15, %s2162_s15   ;;  %s1792_s14 = sphi %s1829_s14, %s2161_s14   ;;  %s1788_s13 = sphi %s1827_s13, %s2160_s13   ;;  %s1784_s12 = sphi %s1825_s12, %s2159_s12  }
   0x4   : > { %s1850_s18 = sadd.s32 1, %s1796_s15   ;;  %s91_s19 = sadd.s32 1, %s1792_s14 }
   0x5   : > { %s88_s20 = ssub.s32 %s1796_s15, %s1850_s18  ;;  %p101_p0 = scmp.ne.s32.totalorder %s1792_s14, %s1788_s13 }
   0x6   : > { %p89_p1 = scmp.eq.s32.totalorder %s88_s20, 0  ;;  %p102_p2 = scmp.eq.s32.totalorder %s1846_s16, 1 }
   0x7   : > { %p107_p3 = scmp.ne.s32.totalorder %s1788_s13, %s1784_s12  ;;  %p108_p4 = scmp.eq.s32.totalorder %s1320_s17, 1 }
   0x8   : > { %s1861_s21 = scalar_select %p89_p1, %s1792_s14, %s91_s19  }
   0x9   : > { %p1863_p5 = por %p102_p2, %p101_p0  ;;  %p1867_p6 = por %p108_p4, %p107_p3 }
   0xa   : > { %p1323_p7 = scmp.ge.s32.totalorder %s1796_s15, 1  ;;  %p141_p8 = scmp.lt.s32.totalorder %s1796_s15, 3 }
   0xc   : > { %p142_p9 = pnand %p1323_p7, %p141_p8 }
   0xd   : > { %v172_v0 = vld [vmem:[%s2155_s2] sm:$0xff] (!%p142_p9)  ;;  %v173_v1 = vld [vmem:[%s2155_s2 + $0x8] sm:$0xff] (!%p142_p9)  ;;  %v174_v2 = vld [vmem:[%s2155_s2 + $0x10] sm:$0xff] (!%p142_p9)  ;;  %s1324_s30 = sshll.u32 (!%p142_p9), %s1846_s16, 1  ;;  %vm185_vm0 = vcmask (!%p142_p9), 523264   ;;  %vm269_vm1 = vcmask (!%p142_p9), 261120  }
   0xe   : > { %145 = sbr.rel (%p142_p9) target bundleno = 3435 (0xd6b), region = 32  ;;  %v1541_v3 = vpack.c.bf16 (!%p142_p9), %v173_v1, %v172_v0  ;;  %v175_v4 = vld [vmem:[%s2155_s2 + $0x18] sm:$0xff] (!%p142_p9)  ;;  %p165_p10 = scmp.lt.s32.totalorder (!%p142_p9), %s1324_s30, 3  ;;  %v176_v6 = vld [vmem:[%s2155_s2 + $0x20] sm:$0xff] (!%p142_p9)  ;;  %v177_v7 = vld [vmem:[%s2155_s2 + $0x28] sm:$0xff] (!%p142_p9)  ;;  %vm445_vm2 = vcmask (!%p142_p9), 130048  }
   0xf   : > { %v1545_v5 = vpack.c.bf16 (!%p142_p9), %v175_v4, %v174_v2  ;;  %v1549_v8 = vpack.c.bf16 (!%p142_p9), %v177_v7, %v176_v6  ;;  %v178_v9 = vld [vmem:[%s2155_s2 + $0x30] sm:$0xff] (!%p142_p9)  ;;  %v179_v10 = vld [vmem:[%s2155_s2 + $0x38] sm:$0xff] (!%p142_p9)  ;;  %v1326_v14 = vld [vmem:[%s2155_s2 + $0x120] ss:$0 sm:$0xff] (!%p142_p9)  ;;  %s1798_s29 = smov (!%p142_p9), 80   ;;  %s1800_s4 = smov (!%p142_p9), 112  }
  0x10   : > { %1542 = vmatprep.subr.bf16.mxu1 (!%p142_p9), %v1541_v3  ;;  %v1553_v12 = vpack.c.bf16 (!%p142_p9), %v179_v10, %v178_v9  ;;  %v1329_v38 = vld [vmem:[%s2155_s2 + $0x121] ss:$0 sm:$0xff] (!%p142_p9)  ;;  %v1330_v40 = vld [vmem:[%s2155_s2 + $0x122] ss:$0 sm:$0xff] (!%p142_p9)  ;;  %v350_v60 = vld [vmem:[%s2155_s2 + $0x48] sm:$0xff] (!%p142_p9)  ;;  %s1801_s19 = smov (!%p142_p9), 48  }
  0x11   : > { %1544 = vmatpush3.bf16.msra.mxu1 (!%p142_p9), %v1541_v3  ;;  %v349_v59 = vld [vmem:[%s2155_s2 + $0x40] sm:$0xff] (!%p142_p9)  ;;  %v351_v62 = vld [vmem:[%s2155_s2 + $0x50] sm:$0xff] (!%p142_p9)  ;;  %v352_v63 = vld [vmem:[%s2155_s2 + $0x58] sm:$0xff] (!%p142_p9)  ;;  %s1802_s20 = smov (!%p142_p9), 64   ;;  %s1803_s5 = smov (!%p142_p9), 16   ;;  %vm1250_vm4 = vcmask (!%p142_p9), 253952  }
  0x12   : > { %1546 = vmatprep.subr.bf16.mxu1 (!%p142_p9), %v1545_v5  ;;  %v1557_v61 = vpack.c.bf16 (!%p142_p9), %v350_v60, %v349_v59  ;;  %v1561_v0 = vpack.c.bf16 (!%p142_p9), %v352_v63, %v351_v62  ;;  %v1332_v10 = vld [vmem:[%s2155_s2 + $0x124] ss:$0 sm:$0xff] (!%p142_p9)  ;;  %vm1566_vm3 = vmpackc.low (!%p142_p9), %vm445_vm2, %vm445_vm2  ;;  %s162_s6 = sand.u32 (!%p142_p9), 1, %s1788_s13   ;;  %s1361_s7 = sshll.u32 (!%p142_p9), %s1846_s16, 4 }
  0x13   : > { %s163_s8 = scalar_lea.vmem (!%p142_p9), [#allocation2], %s162_s6  ;;  %s2111_s17 = scalar_lea.hbm (!%p142_p9), %s2156_s3, %s1361_s7 }
  0x14   : > { %s1265_s9 = sshll.u32 (!%p142_p9), %s163_s8, 4  ;;  %s1804_s16 = smov (!%p142_p9), [#allocation2]   ;;  %s2113_s9 = int_to_ptr.vmem [resolvable:$true] %s1265_s9 }
  0x15   : > { %s2164_s30 = smov (!%p165_p10, %s1324_s30), 3  ;;  %1548 = vmatpush3.bf16.msra.mxu1 %v1545_v5  ;;  %s1738_s24 = sshll.u32 %s1804_s16, 4  ;;  %s1739_s24 = int_to_ptr.vmem [resolvable:$false] %s1738_s24 }
  0x16   : > { %s1325_s10 = sshll.u32 %s2164_s30, 3  ;;  %1550 = vmatprep.subr.bf16.mxu1 %v1549_v8  ;;  %s1799_s30 = smov 96  }
  0x17   : > { %s168_s26 = scalar_lea.vmem %s2153_s0, %s1325_s10  ;;  %s1740_s25 = scalar_lea.vmem %s1739_s24, 32 }
  0x18   : > { %v170_v11 = vld [vmem:[%s168_s26] sm:$0xff]  ;;  %v171_v13 = vld [vmem:[%s168_s26 + $0x8] sm:$0xff]  ;;  %p1741_p0 = scmp.lt.s32.totalorder %s2113_s9, %s1739_s24 }
  0x19   : > { %1442 = vmatprep.mubr.msk.f32.mxu1 %vm185_vm0, %v170_v11  ;;  %1552 = vmatpush3.bf16.msra.mxu1 %v1549_v8  ;;  %v1331_v8 = vld [vmem:[%s2155_s2 + $0x123] ss:$0 sm:$0xff] }
  0x1a   : > { %1554 = vmatprep.subr.bf16.mxu1 %v1553_v12 }
  0x1d   : > { %1556 = vmatpush3.bf16.msra.mxu1 %v1553_v12 }
  0x1e   : > { %1558 = vmatprep.subr.bf16.mxu1 %v1557_v61 }
  0x20   : > { %1443 = vmatmul.mubr.msk.f32.vlgmr.msra.gmra.mrb[0].mxu1 %vm185_vm0, %v171_v13 }
  0x21   : > { %1560 = vmatpush3.bf16.msra.mxu1 %v1557_v61 }
  0x22   : > { %1562 = vmatprep.subr.bf16.mxu1 %v1561_v0 }
  0x25   : > { %1564 = vmatpush3.bf16.msra.mxu1 %v1561_v0 }
  0xf3   : > { %v1444_v15 = vpop.f32.mrb[0].mxu1 }
  0xf4   : > { %v258_v16 = vpop.f32.mrb[1].mxu1  ;;  %v264_v18 = vadd.f32 %v1444_v15, %v1326_v14 }
  0xf5   : > { %v259_v17 = vadd.f32 %v1326_v14, %v258_v16 }
  0xf6   : > { %v273_v20 = vsel %vm269_vm1, %v264_v18, 0.0 }
  0xf7   : > { %v270_v19 = vsel %vm269_vm1, %v259_v17, 0.0 }
  0xf8   : > { %271 = vadd.xlane.f32.xlu0 %v270_v19 }
  0xfc   : > { %274 = vadd.xlane.f32.xlu0 %v273_v20 }
 0x185   : > { %v272_v21 = vpop.xlane.xlu0 %271 }
 0x186   : > { %v277_v22 = vmul.f32 0.03125, %v272_v21 }
 0x188   : > { %v279_v23 = vsub.f32 %v259_v17, %v277_v22  ;;  %v1333_v17 = vld [vmem:[%s2155_s2 + $0x125] ss:$0 sm:$0xff] }
 0x189   : > { %v275_v24 = vpop.xlane.xlu0 %274 }
 0x18a   : > { %v278_v25 = vmul.f32 0.03125, %v275_v24  ;;  %v281_v26 = vmul.f32 %v279_v23, %v279_v23 }
 0x18c   : > { %v280_v27 = vsub.f32 %v264_v18, %v278_v25  ;;  %v283_v28 = vsel %vm269_vm1, %v281_v26, 0.0 }
 0x18d   : > { %284 = vadd.xlane.f32.xlu1 %v283_v28 }
 0x18e   : > { %v282_v29 = vmul.f32 %v280_v27, %v280_v27 }
 0x190   : > { %v286_v30 = vsel %vm269_vm1, %v282_v29, 0.0 }
 0x191   : > { %287 = vadd.xlane.f32.xlu1 %v286_v30 }
 0x21a   : > { %v285_v31 = vpop.xlane.xlu1 %284 }
 0x21b   : > { %v289_v32 = vmul.f32 0.03125, %v285_v31 }
 0x21d   : > { %v291_v33 = vadd.f32 1e-05, %v289_v32 }
 0x21e   : > { %v288_v34 = vpop.xlane.xlu1 %287 }
 0x21f   : > { %1698 = vrsqrt.f32 %v291_v33  ;;  %v290_v35 = vmul.f32 0.03125, %v288_v34  ;;  %v532_v34 = vld [vmem:[%s2154_s1 + $0x8] sm:$0xff] }
 0x221   : > { %v292_v36 = vadd.f32 1e-05, %v290_v35 }
 0x223   : > { %1700 = vrsqrt.f32 %v292_v36 }
 0x229   : > { %v1699_v37 = vpop.eup %1698 }
 0x22a   : > { %v295_v39 = vmul.f32 %v1699_v37, %v279_v23  ;;  %v531_v37 = vld [vmem:[%s2154_s1] sm:$0xff] }
 0x22c   : > { %v301_v41 = vmul.f32 %v1329_v38, %v295_v39 }
 0x22d   : > { %v1701_v42 = vpop.eup %1700 }
 0x22e   : > { %v1914_v43 = vadd.f32 %v1330_v40, %v301_v41  ;;  %v296_v44 = vmul.f32 %v1701_v42, %v280_v27 }
 0x230   : > { %v311_v45 = vsel %vm269_vm1, %v1914_v43, 0.0  ;;  %v302_v46 = vmul.f32 %v1329_v38, %v296_v44 }
 0x231   : > { %312 = vadd.xlane.f32.xlu0 %v311_v45 }
 0x232   : > { %v1918_v47 = vadd.f32 %v1330_v40, %v302_v46  ;;  %v1346_v46 = vld [vmem:[%s2154_s1 + $0x10] sm:$0xff] }
 0x234   : > { %v314_v48 = vsel %vm269_vm1, %v1918_v47, 0.0 }
 0x235   : > { %315 = vadd.xlane.f32.xlu1 %v314_v48 }
 0x2be   : > { %v313_v49 = vpop.xlane.xlu0 %312 }
 0x2bf   : > { %v317_v50 = vmul.f32 0.03125, %v313_v49 }
 0x2c1   : > { %v319_v51 = vsub.f32 %v1914_v43, %v317_v50  ;;  %v1347_v50 = vld [vmem:[%s2154_s1 + $0x18] sm:$0xff] }
 0x2c2   : > { %v316_v52 = vpop.xlane.xlu1 %315 }
 0x2c3   : > { %v318_v53 = vmul.f32 0.03125, %v316_v52  ;;  %v321_v54 = vmul.f32 %v319_v51, %v319_v51 }
 0x2c5   : > { %v320_v55 = vsub.f32 %v1918_v47, %v318_v53  ;;  %v323_v56 = vsel %vm269_vm1, %v321_v54, 0.0 }
 0x2c6   : > { %324 = vadd.xlane.f32.xlu0 %v323_v56 }
 0x2c7   : > { %v322_v57 = vmul.f32 %v320_v55, %v320_v55 }
 0x2c9   : > { %v326_v58 = vsel %vm269_vm1, %v322_v57, 0.0 }
 0x2ca   : > { %327 = vadd.xlane.f32.xlu1 %v326_v58 }
 0x353   : > { %v325_v1 = vpop.xlane.xlu0 %324 }
 0x354   : > { %v329_v2 = vmul.f32 0.03125, %v325_v1 }
 0x356   : > { %v331_v3 = vadd.f32 1e-05, %v329_v2 }
 0x357   : > { %v328_v4 = vpop.xlane.xlu1 %327 }
 0x358   : > { %1702 = vrsqrt.f32 %v331_v3  ;;  %v330_v5 = vmul.f32 0.03125, %v328_v4 }
 0x35a   : > { %v332_v6 = vadd.f32 1e-05, %v330_v5 }
 0x35c   : > { %1704 = vrsqrt.f32 %v332_v6 }
 0x362   : > { %v1703_v7 = vpop.eup %1702 }
 0x363   : > { %v335_v9 = vmul.f32 %v1703_v7, %v319_v51 }
 0x365   : > { %v341_v11 = vmul.f32 %v1331_v8, %v335_v9 }
 0x366   : > { %v1705_v12 = vpop.eup %1704 }
 0x367   : > { %v336_v13 = vmul.f32 %v1705_v12, %v320_v55  ;;  %v347_v14 = vadd.f32 %v1332_v10, %v341_v11 }
 0x369   : > { %v342_v15 = vmul.f32 %v1331_v8, %v336_v13  ;;  %1453 = vmatprep.mubr.msk.f32.mxu1 %vm269_vm1, %v347_v14 }
 0x36b   : > { %v348_v16 = vadd.f32 %v1332_v10, %v342_v15 }
 0x36d   : > { %1454 = vmatmul.mubr.msk.f32.vlgmr.msra.gmra.mrb[2].mxu1 %vm269_vm1, %v348_v16 }
 0x440   : > { %v1455_v18 = vpop.f32.mrb[2].mxu1 }
 0x441   : > { %v436_v19 = vadd.f32 %v1455_v18, %v1333_v17  ;;  %v430_v20 = vpop.f32.mrb[3].mxu1 }
 0x442   : > { %v431_v21 = vadd.f32 %v1333_v17, %v430_v20 }
 0x444   : > { %1460 = vmatprep.mubr.msk.f32.mxu1 %vm445_vm2, %v431_v21  ;;  %v1950_v22 = vpack.i.bf16 %v436_v19, %v431_v21 }
 0x446   : > { %1684 = vrot.lane.b32.xlu1 %v1950_v22, %s1798_s29  ;;  %1679 = vrot.lane.b32.xlu0 %v1950_v22, %s1799_s30 }
 0x44a   : > { %644 = vrot.lane.b32.xlu1 %v431_v21, %s1800_s4 }
 0x44e   : > { %646 = vrot.lane.b32.xlu1 %v436_v19, %s1800_s4 }
 0x4b8   : > { %v1685_v23 = vpop.permute.xlu1 %1684  ;;  %v1680_v24 = vpop.permute.xlu0 %1679 }
 0x4b9   : > { %v1687_v25 = vunpack.i.h.bf16 %v1685_v23  ;;  %v1686_v26 = vunpack.i.l.bf16 %v1685_v23  ;;  %v1682_v27 = vunpack.i.h.bf16 %v1680_v24  ;;  %v1681_v28 = vunpack.i.l.bf16 %v1680_v24 }
 0x4bb   : > { %v1565_v29 = vpack.c.bf16 %v1682_v27, %v1681_v28  ;;  %v1575_v30 = vpack.c.bf16 %v1687_v25, %v1686_v26 }
 0x4bc   : > { %v645_v31 = vpop.permute.xlu1 %644 }
 0x4bd   : > { %1567 = vmatprep.subr.msk.bf16.mxu1 %vm1566_vm3, %v1565_v29 }
 0x4be   : > { %1570 = vmatpush3.bf16.xpose.msk.msra.mxu1 %vm1566_vm3, %v1565_v29 }
 0x4bf   : > { %1577 = vmatprep.subr.msk.bf16.mxu1 %vm1566_vm3, %v1575_v30 }
 0x4c0   : > { %v647_v32 = vpop.permute.xlu1 %646 }
 0x4c5   : > { %1461 = vmatmul.mubr.msk.f32.vlgmr.msra.gmra.mrb[4].mxu1 %vm445_vm2, %v436_v19 }
 0x4c6   : > { %1580 = vmatpush3.bf16.xpose.msk.msra.mxu1 %vm1566_vm3, %v1575_v30  ;;  %1474 = vmatprep.mubr.msk.f32.mxu1 %vm445_vm2, %v645_v31  ;;  %v861_v31 = vld [vmem:[%s2155_s2 + $0x60] sm:$0xff] }
 0x4cd   : > { %1475 = vmatmul.mubr.msk.f32.vlgmr.msra.gmra.mrb[6].mxu1 %vm445_vm2, %v647_v32  ;;  %v862_v32 = vld [vmem:[%s2155_s2 + $0x68] sm:$0xff] }
 0x598   : > { %v1462_v33 = vpop.f32.mrb[4].mxu1 }
 0x599   : > { %v530_v35 = vmul.f32 0.25, %v1462_v33  ;;  %v520_v36 = vpop.f32.mrb[5].mxu1  ;;  %v1585_v33 = vpack.c.bf16 %v862_v32, %v861_v31  ;;  %v1107_v31 = vld [vmem:[%s2155_s2 + $0xd0] sm:$0xff]  ;;  %v1108_v32 = vld [vmem:[%s2155_s2 + $0xd8] sm:$0xff] }
 0x59a   : > { %v529_v38 = vmul.f32 0.25, %v520_v36 }
 0x59b   : > { %v534_v39 = vadd.f32 %v532_v34, %v530_v35  ;;  %v863_v34 = vld [vmem:[%s2155_s2 + $0x70] sm:$0xff]  ;;  %v864_v35 = vld [vmem:[%s2155_s2 + $0x78] sm:$0xff] }
 0x59c   : > { %v533_v40 = vadd.f32 %v531_v37, %v529_v38  ;;  %v1589_v36 = vpack.c.bf16 %v864_v35, %v863_v34  ;;  %v1109_v34 = vld [vmem:[%s2155_s2 + $0xe0] sm:$0xff]  ;;  %v1110_v35 = vld [vmem:[%s2155_s2 + $0xe8] sm:$0xff] }
 0x59d   : > { %v538_v41 = vsel %vm445_vm2, %v534_v39, -inf }
 0x59e   : > { %539 = vmax.xlane.f32.xlu1 %v538_v41  ;;  %v535_v42 = vsel %vm445_vm2, %v533_v40, -inf }
 0x59f   : > { %536 = vmax.xlane.f32.xlu0 %v535_v42 }
 0x5a0   : > { %v1476_v44 = vpop.f32.mrb[6].mxu1 }
 0x5a1   : > { %v726_v45 = vpop.f32.mrb[7].mxu1  ;;  %v736_v48 = vmul.f32 0.25, %v1476_v44 }
 0x5a2   : > { %v735_v49 = vmul.f32 0.25, %v726_v45 }
 0x5a3   : > { %v741_v53 = vadd.f32 %v1347_v50, %v736_v48 }
 0x5a4   : > { %v740_v51 = vadd.f32 %v1346_v46, %v735_v49  ;;  %v1350_v46 = vld [vmem:[%s2155_s2 + $0x126] ss:$0 sm:$0xff] }
 0x5a5   : > { %v745_v54 = vsel %vm445_vm2, %v741_v53, -inf }
 0x5a6   : > { %v742_v52 = vsel %vm445_vm2, %v740_v51, -inf }
 0x5a7   : > { %743 = vmax.xlane.f32.xlu0 %v742_v52 }
 0x5ab   : > { %746 = vmax.xlane.f32.xlu0 %v745_v54 }
 0x62b   : > { %v540_v55 = vpop.xlane.xlu1 %539 }
 0x62c   : > { %v542_v56 = vsub.f32 %v534_v39, %v540_v55  ;;  %v537_v57 = vpop.xlane.xlu0 %536 }
 0x62d   : > { %v541_v58 = vsub.f32 %v533_v40, %v537_v57 }
 0x62e   : > { %v545_v59 = vmul.f32 1.442695, %v542_v56 }
 0x62f   : > { %v543_v60 = vmul.f32 1.442695, %v541_v58 }
 0x630   : > { %1706 = vpow2.f32 %v545_v59 }
 0x631   : > { %1708 = vpow2.f32 %v543_v60 }
 0x634   : > { %v744_v61 = vpop.xlane.xlu0 %743 }
 0x635   : > { %v748_v62 = vsub.f32 %v740_v51, %v744_v61 }
 0x637   : > { %v750_v63 = vmul.f32 1.442695, %v748_v62 }
 0x638   : > { %v747_v0 = vpop.xlane.xlu0 %746 }
 0x639   : > { %1710 = vpow2.f32 %v750_v63  ;;  %v749_v1 = vsub.f32 %v741_v53, %v747_v0  ;;  %v993_v0 = vld [vmem:[%s2155_s2 + $0x80] sm:$0xff] }
 0x63a   : > { %v1707_v2 = vpop.eup %1706 }
 0x63b   : > { %v1709_v3 = vpop.eup %1708  ;;  %v752_v4 = vmul.f32 1.442695, %v749_v1  ;;  %v550_v5 = vsel %vm445_vm2, %v1707_v2, 0.0  ;;  %v994_v1 = vld [vmem:[%s2155_s2 + $0x88] sm:$0xff] }
 0x63c   : > { %551 = vadd.xlane.f32.xlu1 %v550_v5  ;;  %v547_v6 = vsel %vm445_vm2, %v1709_v3, 0.0 }
 0x63d   : > { %1712 = vpow2.f32 %v752_v4  ;;  %548 = vadd.xlane.f32.xlu0 %v547_v6  ;;  %v996_v4 = vld [vmem:[%s2155_s2 + $0x98] sm:$0xff] }
 0x643   : > { %v1711_v7 = vpop.eup %1710 }
 0x644   : > { %v754_v8 = vsel %vm445_vm2, %v1711_v7, 0.0 }
 0x645   : > { %755 = vadd.xlane.f32.xlu0 %v754_v8 }
 0x647   : > { %v1713_v9 = vpop.eup %1712 }
 0x648   : > { %v757_v10 = vsel %vm445_vm2, %v1713_v9, 0.0 }
 0x649   : > { %758 = vadd.xlane.f32.xlu1 %v757_v10 }
 0x65a   : > { %1694 = vrot.lane.b32.xlu1 %v1950_v22, %s1801_s19  ;;  %s1253_s19 = scalar_lea.sflag [#allocation3], %s162_s6 }
 0x65b   : > { %1689 = vrot.lane.b32.xlu0 %v1950_v22, %s1802_s20  ;;  %s1734_s20 = scalar_lea.vmem %s2113_s9, 16 }
 0x65c   : > { %p1735_p11 = scmp.ne.s32.totalorder %s2113_s9, %s1734_s20  ;;  %p1742_p1 = scmp.lt.s32.totalorder %s1740_s25, %s1734_s20 }
 0x65e   : > { %p1736_p12 = pnand %p1735_p11, %p1863_p5  ;;  %p1743_p2 = por %p1742_p1, %p1741_p0 }
 0x660   : > { %p1737_p13 = pneg %p1736_p12 }
 0x662   : > { %p1744_p3 = pnand %p1743_p2, %p1737_p13 }
 0x6c9   : > { %v552_v12 = vpop.xlane.xlu1 %551 }
 0x6ca   : > { %v549_v11 = vpop.xlane.xlu0 %548 }
 0x6cb   : > { %1714 = vrcp.f32 %v549_v11 }
 0x6cc   : > { %1716 = vrcp.f32 %v552_v12 }
 0x6d2   : > { %v756_v13 = vpop.xlane.xlu0 %755 }
 0x6d3   : > { %1718 = vrcp.f32 %v756_v13  ;;  %v1353_v13 = vld [vmem:[%s2155_s2 + $0x127] ss:$0 sm:$0xff] }
 0x6d5   : > { %v1715_v14 = vpop.eup %1714 }
 0x6d6   : > { %v759_v15 = vpop.xlane.xlu1 %758  ;;  %v1690_v16 = vpop.permute.xlu0 %1689  ;;  %v555_v17 = vmul.f32 %v1715_v14, %v1709_v3  ;;  %v995_v3 = vld [vmem:[%s2155_s2 + $0x90] sm:$0xff] }
 0x6d7   : > { %1720 = vrcp.f32 %v759_v15  ;;  %v1692_v18 = vunpack.i.h.bf16 %v1690_v16  ;;  %v1691_v19 = vunpack.i.l.bf16 %v1690_v16  ;;  %v1717_v21 = vpop.eup %1716  ;;  %v1597_v5 = vpack.c.bf16 %v996_v4, %v995_v3  ;;  %v1354_v15 = vld [vmem:[%s2155_s2 + $0x128] ss:$0 sm:$0xff] }
 0x6d8   : > { %1467 = vmatprep.mubr.msk.f32.mxu0 %vm445_vm2, %v555_v17  ;;  %v556_v27 = vmul.f32 %v1717_v21, %v1707_v2  ;;  %v1593_v2 = vpack.c.bf16 %v994_v1, %v993_v0 }
 0x6d9   : > { %v1571_v20 = vpack.c.bf16 %v1692_v18, %v1691_v19 }
 0x6da   : > { %v1695_v23 = vpop.permute.xlu1 %1694  ;;  %1594 = vmatprep.subr.bf16.mxu1 %v1593_v2 }
 0x6db   : > { %v1697_v24 = vunpack.i.h.bf16 %v1695_v23  ;;  %v1696_v22 = vunpack.i.l.bf16 %v1695_v23  ;;  %1572 = vmatprep.subr.bf16.mxu0 %v1571_v20  ;;  %1596 = vmatpush3.bf16.msra.mxu1 %v1593_v2  ;;  %v1101_v23 = vld [vmem:[%s2155_s2 + $0xa0] sm:$0xff] }
 0x6dc   : > { %1574 = vmatpush3.bf16.msra.mxu0 %v1571_v20  ;;  %1598 = vmatprep.subr.bf16.mxu1 %v1597_v5 }
 0x6dd   : > { %v1719_v25 = vpop.eup %1718  ;;  %v1581_v26 = vpack.c.bf16 %v1697_v24, %v1696_v22  ;;  %v1102_v24 = vld [vmem:[%s2155_s2 + $0xa8] sm:$0xff] }
 0x6de   : > { %v762_v28 = vmul.f32 %v1719_v25, %v1711_v7  ;;  %v1601_v22 = vpack.c.bf16 %v1102_v24, %v1101_v23  ;;  %v1103_v25 = vld [vmem:[%s2155_s2 + $0xb0] sm:$0xff] }
 0x6df   : > { %1468 = vmatmul.mubr.msk.f32.vlgmr.msra.gmra.mrb[0].mxu0 %vm445_vm2, %v556_v27  ;;  %1582 = vmatprep.subr.bf16.mxu0 %v1581_v26 }
 0x6e0   : > { %1584 = vmatpush3.bf16.msra.mxu0 %v1581_v26  ;;  %1481 = vmatprep.mubr.msk.f32.mxu0 %vm445_vm2, %v762_v28  ;;  %v1104_v26 = vld [vmem:[%s2155_s2 + $0xb8] sm:$0xff]  ;;  %v1105_v28 = vld [vmem:[%s2155_s2 + $0xc0] sm:$0xff] }
 0x6e1   : > { %v1721_v29 = vpop.eup %1720  ;;  %1586 = vmatprep.subr.bf16.mxu0 %v1585_v33  ;;  %1600 = vmatpush3.bf16.msra.mxu1 %v1597_v5  ;;  %v1605_v27 = vpack.c.bf16 %v1104_v26, %v1103_v25 }
 0x6e2   : > { %v763_v30 = vmul.f32 %v1721_v29, %v1713_v9  ;;  %v1106_v29 = vld [vmem:[%s2155_s2 + $0xc8] sm:$0xff] }
 0x6e4   : > { %1482 = vmatmul.mubr.msk.f32.vlgmr.msra.gmra.mrb[2].mxu0 %vm445_vm2, %v763_v30  ;;  %v1609_v30 = vpack.c.bf16 %v1106_v29, %v1105_v28 }
 0x6e5   : > { %1588 = vmatpush3.bf16.msra.mxu0 %v1585_v33  ;;  %v1613_v33 = vpack.c.bf16 %v1108_v32, %v1107_v31  ;;  %v1359_v31 = vld [vmem:[%s2155_s2 + $0x12b] ss:$0 sm:$0xff] }
 0x6e6   : > { %1590 = vmatprep.subr.bf16.mxu0 %v1589_v36 }
 0x6e9   : > { %1592 = vmatpush3.bf16.msra.mxu0 %v1589_v36  ;;  %v1111_v36 = vld [vmem:[%s2155_s2 + $0xf0] sm:$0xff] }
 0x6ea   : > { %1602 = vmatprep.subr.bf16.mxu0 %v1601_v22 }
 0x7b2   : > { %v1469_v37 = vpop.f32.mrb[0].mxu0 }
 0x7b3   : > { %v635_v38 = vpop.f32.mrb[1].mxu0 }
 0x7b7   : > { %v1483_v39 = vpop.f32.mrb[2].mxu0 }
 0x7b8   : > { %v842_v40 = vpop.f32.mrb[3].mxu0 }
 0x7b9   : > { %853 = vrot.lane.b32.xlu1 %v842_v40, %s1803_s5  ;;  %v1113_v40 = vld [vmem:[%s2155_s2 + $0x100] sm:$0xff] }
 0x7bd   : > { %855 = vrot.lane.b32.xlu1 %v1483_v39, %s1803_s5 }
 0x82b   : > { %v854_v41 = vpop.permute.xlu1 %853 }
 0x82c   : > { %v859_v42 = vsel %vm445_vm2, %v635_v38, %v854_v41  ;;  %v1112_v38 = vld [vmem:[%s2155_s2 + $0xf8] sm:$0xff]  ;;  %v1114_v41 = vld [vmem:[%s2155_s2 + $0x108] sm:$0xff] }
 0x82d   : > { %1492 = vmatprep.mubr.msk.f32.mxu0 %vm269_vm1, %v859_v42  ;;  %v1621_v39 = vpack.c.bf16 %v1112_v38, %v1111_v36  ;;  %v1625_v42 = vpack.c.bf16 %v1114_v41, %v1113_v40 }
 0x82f   : > { %v856_v44 = vpop.permute.xlu1 %855 }
 0x830   : > { %v860_v45 = vsel %vm445_vm2, %v1469_v37, %v856_v44  ;;  %v1617_v37 = vpack.c.bf16 %v1110_v35, %v1109_v34  ;;  %v1115_v44 = vld [vmem:[%s2155_s2 + $0x110] sm:$0xff]  ;;  %v1360_v34 = vld [vmem:[%s2155_s2 + $0x12c] ss:$0 sm:$0xff] }
 0x831   : > { %1493 = vmatmul.mubr.msk.f32.vlgmr.msra.gmra.mrb[4].mxu0 %vm269_vm1, %v860_v45  ;;  %v1116_v45 = vld [vmem:[%s2155_s2 + $0x118] sm:$0xff] }
 0x832   : > { %1604 = vmatpush3.bf16.msra.mxu0 %v1601_v22 }
 0x833   : > { %1606 = vmatprep.subr.bf16.mxu0 %v1605_v27 }
 0x836   : > { %1608 = vmatpush3.bf16.msra.mxu0 %v1605_v27 }
 0x837   : > { %1610 = vmatprep.subr.bf16.mxu0 %v1609_v30 }
 0x83a   : > { %1612 = vmatpush3.bf16.msra.mxu0 %v1609_v30 }
 0x83b   : > { %1614 = vmatprep.subr.bf16.mxu0 %v1613_v33 }
 0x83e   : > { %1616 = vmatpush3.bf16.msra.mxu0 %v1613_v33 }
 0x83f   : > { %1618 = vmatprep.subr.bf16.mxu0 %v1617_v37 }
 0x842   : > { %1620 = vmatpush3.bf16.msra.mxu0 %v1617_v37 }
 0x843   : > { %1622 = vmatprep.subr.bf16.mxu0 %v1621_v39 }
 0x846   : > { %1624 = vmatpush3.bf16.msra.mxu0 %v1621_v39 }
 0x847   : > { %1626 = vmatprep.subr.bf16.mxu0 %v1625_v42 }
 0x84a   : > { %1628 = vmatpush3.bf16.msra.mxu0 %v1625_v42 }
 0x904   : > { %v1494_v48 = vpop.f32.mrb[4].mxu0 }
 0x905   : > { %v948_v49 = vadd.f32 %v1494_v48, %v1350_v46  ;;  %v942_v50 = vpop.f32.mrb[5].mxu0  ;;  %v1355_v48 = vld [vmem:[%s2155_s2 + $0x129] ss:$0 sm:$0xff] }
 0x906   : > { %v943_v51 = vadd.f32 %v1350_v46, %v942_v50  ;;  %v1629_v46 = vpack.c.bf16 %v1116_v45, %v1115_v44 }
 0x907   : > { %v2005_v52 = vadd.f32 %v948_v49, %v1918_v47 }
 0x908   : > { %v2008_v53 = vadd.f32 %v943_v51, %v1914_v43  ;;  %1630 = vmatprep.subr.bf16.mxu0 %v1629_v46 }
 0x909   : > { %v958_v54 = vsel %vm269_vm1, %v2005_v52, 0.0  ;;  %1632 = vmatpush3.bf16.msra.mxu0 %v1629_v46 }
 0x90a   : > { %959 = vadd.xlane.f32.xlu1 %v958_v54  ;;  %v955_v55 = vsel %vm269_vm1, %v2008_v53, 0.0 }
 0x90b   : > { %956 = vadd.xlane.f32.xlu0 %v955_v55 }
 0x997   : > { %v960_v56 = vpop.xlane.xlu1 %959 }
 0x998   : > { %v962_v57 = vmul.f32 0.03125, %v960_v56  ;;  %v957_v58 = vpop.xlane.xlu0 %956 }
 0x999   : > { %v961_v59 = vmul.f32 0.03125, %v957_v58 }
 0x99a   : > { %v964_v60 = vsub.f32 %v2005_v52, %v962_v57 }
 0x99b   : > { %v963_v47 = vsub.f32 %v2008_v53, %v961_v59 }
 0x99c   : > { %v966_v62 = vmul.f32 %v964_v60, %v964_v60 }
 0x99d   : > { %v965_v61 = vmul.f32 %v963_v47, %v963_v47 }
 0x99e   : > { %v970_v63 = vsel %vm269_vm1, %v966_v62, 0.0 }
 0x99f   : > { %v967_v43 = vsel %vm269_vm1, %v965_v61, 0.0 }
 0x9a0   : > { %968 = vadd.xlane.f32.xlu0 %v967_v43 }
 0x9a4   : > { %971 = vadd.xlane.f32.xlu0 %v970_v63 }
 0xa2d   : > { %v969_v6 = vpop.xlane.xlu0 %968 }
 0xa2e   : > { %v973_v7 = vmul.f32 0.03125, %v969_v6 }
 0xa30   : > { %v975_v8 = vadd.f32 1e-05, %v973_v7  ;;  %v1358_v7 = vld [vmem:[%s2155_s2 + $0x12a] ss:$0 sm:$0xff] }
 0xa31   : > { %v972_v9 = vpop.xlane.xlu0 %971 }
 0xa32   : > { %1722 = vrsqrt.f32 %v975_v8  ;;  %v974_v10 = vmul.f32 0.03125, %v972_v9 }
 0xa34   : > { %v976_v11 = vadd.f32 1e-05, %v974_v10 }
 0xa36   : > { %1724 = vrsqrt.f32 %v976_v11 }
 0xa3c   : > { %v1723_v12 = vpop.eup %1722 }
 0xa3d   : > { %v979_v14 = vmul.f32 %v1723_v12, %v963_v47 }
 0xa3f   : > { %v985_v16 = vmul.f32 %v1353_v13, %v979_v14 }
 0xa40   : > { %v1725_v17 = vpop.eup %1724 }
 0xa41   : > { %v980_v18 = vmul.f32 %v1725_v17, %v964_v60  ;;  %v991_v19 = vadd.f32 %v1354_v15, %v985_v16 }
 0xa43   : > { %v986_v20 = vmul.f32 %v1353_v13, %v980_v18  ;;  %1503 = vmatprep.mubr.msk.f32.mxu1 %vm269_vm1, %v991_v19 }
 0xa45   : > { %v992_v21 = vadd.f32 %v1354_v15, %v986_v20 }
 0xa47   : > { %1504 = vmatmul.mubr.msk.f32.vlgmr.msra.gmra.mrb[8].mxu1 %vm269_vm1, %v992_v21 }
 0xb1a   : > { %v1505_v49 = vpop.f32.mrb[8].mxu1 }
 0xb1b   : > { %v1080_v50 = vadd.f32 %v1505_v49, %v1355_v48  ;;  %v1074_v51 = vpop.f32.mrb[9].mxu1 }
 0xb1c   : > { %v1075_v54 = vadd.f32 %v1355_v48, %v1074_v51 }
 0xb1d   : > { %v1084_v55 = vmul.f32 %v1080_v50, %v1080_v50 }
 0xb1e   : > { %v1083_v56 = vmul.f32 %v1075_v54, %v1075_v54 }
 0xb1f   : > { %v1086_v57 = vmul.f32 %v1084_v55, %v1080_v50 }
 0xb20   : > { %v1085_v58 = vmul.f32 %v1083_v56, %v1075_v54 }
 0xb21   : > { %v1088_v59 = vmul.f32 0.044715, %v1086_v57 }
 0xb22   : > { %v1087_v60 = vmul.f32 0.044715, %v1085_v58 }
 0xb23   : > { %v1090_v47 = vadd.f32 %v1088_v59, %v1080_v50 }
 0xb24   : > { %v1089_v61 = vadd.f32 %v1087_v60, %v1075_v54 }
 0xb25   : > { %v1092_v43 = vmul.f32 0.7978846, %v1090_v47 }
 0xb26   : > { %v1091_v62 = vmul.f32 0.7978846, %v1089_v61 }
 0xb27   : > { %1726 = vtanh.f32 %v1092_v43 }
 0xb28   : > { %1728 = vtanh.f32 %v1091_v62 }
 0xb31   : > { %v1727_v63 = vpop.eup %1726 }
 0xb32   : > { %v1729_v0 = vpop.eup %1728  ;;  %v1096_v1 = vadd.f32 1.0, %v1727_v63 }
 0xb33   : > { %v1095_v2 = vadd.f32 1.0, %v1729_v0 }
 0xb34   : > { %v1098_v3 = vmul.f32 0.5, %v1096_v1 }
 0xb35   : > { %v1097_v4 = vmul.f32 0.5, %v1095_v2 }
 0xb36   : > { %v1100_v6 = vmul.f32 %v1098_v3, %v1080_v50 }
 0xb37   : > { %v1099_v5 = vmul.f32 %v1097_v4, %v1075_v54 }
 0xb39   : > { %1538 = vmatprep.mubr.f32.mxu0 %v1099_v5 }
 0xb3a   : > { %1539 = vmatmul.mubr.f32.vlgmr.msra.gmra.mrb[6].mxu0 %v1100_v6 }
 0xc0d   : > { %v1540_v8 = vpop.f32.mrb[6].mxu0 }
 0xc0e   : > { %v1194_v9 = vadd.f32 %v1540_v8, %v1358_v7  ;;  %v1188_v10 = vpop.f32.mrb[7].mxu0 }
 0xc0f   : > { %v1189_v11 = vadd.f32 %v1358_v7, %v1188_v10 }
 0xc10   : > { %v1198_v12 = vadd.f32 %v1194_v9, %v2005_v52 }
 0xc11   : > { %v1197_v13 = vadd.f32 %v1189_v11, %v2008_v53 }
 0xc12   : > { %v1204_v14 = vsel %vm269_vm1, %v1198_v12, 0.0 }
 0xc13   : > { %1205 = vadd.xlane.f32.xlu1 %v1204_v14  ;;  %v1201_v15 = vsel %vm269_vm1, %v1197_v13, 0.0 }
 0xc14   : > { %1202 = vadd.xlane.f32.xlu0 %v1201_v15 }
 0xca0   : > { %v1206_v16 = vpop.xlane.xlu1 %1205 }
 0xca1   : > { %v1208_v17 = vmul.f32 0.03125, %v1206_v16  ;;  %v1203_v18 = vpop.xlane.xlu0 %1202 }
 0xca2   : > { %v1207_v19 = vmul.f32 0.03125, %v1203_v18 }
 0xca3   : > { %v1210_v20 = vsub.f32 %v1198_v12, %v1208_v17 }
 0xca4   : > { %v1209_v21 = vsub.f32 %v1197_v13, %v1207_v19 }
 0xca5   : > { %v1212_v23 = vmul.f32 %v1210_v20, %v1210_v20 }
 0xca6   : > { %v1211_v24 = vmul.f32 %v1209_v21, %v1209_v21 }
 0xca7   : > { %v1216_v22 = vsel %vm269_vm1, %v1212_v23, 0.0 }
 0xca8   : > { %1217 = vadd.xlane.f32.xlu1 %v1216_v22  ;;  %v1213_v52 = vsel %vm269_vm1, %v1211_v24, 0.0 }
 0xca9   : > { %1214 = vadd.xlane.f32.xlu0 %v1213_v52 }
 0xd35   : > { %v1218_v53 = vpop.xlane.xlu1 %1217 }
 0xd36   : > { %v1220_v25 = vmul.f32 0.03125, %v1218_v53  ;;  %v1215_v26 = vpop.xlane.xlu0 %1214 }
 0xd37   : > { %v1219_v27 = vmul.f32 0.03125, %v1215_v26 }
 0xd38   : > { %v1222_v28 = vadd.f32 1e-05, %v1220_v25 }
 0xd39   : > { %v1221_v29 = vadd.f32 1e-05, %v1219_v27 }
 0xd3a   : > { %1730 = vrsqrt.f32 %v1222_v28 }
 0xd3b   : > { %1732 = vrsqrt.f32 %v1221_v29 }
 0xd44   : > { %v1731_v30 = vpop.eup %1730 }
 0xd45   : > { %v1733_v32 = vpop.eup %1732  ;;  %v1226_v33 = vmul.f32 %v1731_v30, %v1210_v20 }
 0xd46   : > { %v1225_v35 = vmul.f32 %v1733_v32, %v1209_v21 }
 0xd47   : > { %v1232_v36 = vmul.f32 %v1359_v31, %v1226_v33 }
 0xd48   : > { %v1231_v37 = vmul.f32 %v1359_v31, %v1225_v35 }
 0xd49   : > { %v1238_v38 = vadd.f32 %v1360_v34, %v1232_v36 }
 0xd4a   : > { %v1237_v39 = vadd.f32 %v1360_v34, %v1231_v37 }
 0xd4b   : > { %v1240_v40 = vsel %vm269_vm1, %v1238_v38, 0.0 }
 0xd4c   : > { %v1239_v41 = vsel %vm269_vm1, %v1237_v39, 0.0 }
 0xd4d   : > { %v1241_v42 = vadd.f32 %v1240_v40, %v1239_v41 }
 0xd4f   : > { %v1242_v44 = vrot.slane %v1241_v42, 4 }
 0xd51   : > { %v1243_v45 = vadd.f32 %v1242_v44, %v1241_v42 }
 0xd53   : > { %v1244_v46 = vrot.slane %v1243_v45, 2 }
 0xd55   : > { %v1245_v48 = vadd.f32 %v1244_v46, %v1243_v45 }
 0xd57   : > { %v1246_v49 = vrot.slane %v1245_v48, 1 }
 0xd59   : > { %v1247_v50 = vadd.f32 %v1246_v49, %v1245_v48 }
 0xd5b   : > { %v1249_v51 = vmul.f32 0.0625, %v1247_v50 }
 0xd5d   : > { %1251 = vst.msk [vmem:[%s163_s8] sm:$0x1] %vm1250_vm4, %v1249_v51 }
 0xd5e   : > { %1747 = shalt.err (!%p1744_p3)
}
 0xd5f   : > { %s1748_s26 = scalar_lea.hbm %s2111_s17, 16  ;;  %s1752_s29 = scalar_lea.hbm %s2156_s3, 32 }
 0xd60   : > { %p1749_p4 = scmp.ne.s32.totalorder %s2111_s17, %s1748_s26  ;;  %p1753_p9 = scmp.lt.u32.totalorder %s2111_s17, %s2156_s3 }
 0xd61   : > { %p1754_p10 = scmp.lt.u32.totalorder %s1752_s29, %s1748_s26  ;;  %p1756_p12 = scmp.lt.u32.totalorder %s1748_s26, %s2111_s17 }
 0xd62   : > { %p1750_p7 = pnand %p1749_p4, %p1863_p5 }
 0xd63   : > { %p1755_p11 = por %p1754_p10, %p1753_p9 }
 0xd64   : > { %p1751_p8 = pneg %p1750_p7 }
 0xd65   : > { %p1757_p13 = por %p1756_p12, %p1755_p11 }
 0xd67   : > { %p1758_p0 = pnand %p1757_p13, %p1751_p8 }
 0xd69   : > { %1761 = shalt.err (!%p1758_p0)
}
 0xd6a   : > { %1633 = dma.vmem_to_hbm [thread:$0]  (%p1863_p5), %s2113_s9, 16, %s2111_s17, %s1253_s19  }
 0xd6b PF: > { %p1639_p1 = scmp.ge.s32.totalorder %s1796_s15, 2  ;;  %s1277_s5 = sand.u32 1, %s1784_s12  }
 0xd6c   : > { %s1278_s6 = scalar_lea.sflag [#allocation3], %s1277_s5 }
 0xd6d   : > { %p1636_p2 = pnand %p1639_p1, %p1867_p6 }
 0xd6f   : > { %1779 = dma.done.wait (!%p1636_p2), %s1278_s6, 16  }
 0xd70   : > { %1781 = vsyncadd (!%p1636_p2), %s1278_s6, 4294967280  ;;  %p13_p3 = scmp.ge.s32.totalorder %s1850_s18, 4   ;;  %s2159_s12 = smov %s1788_s13 }
 0xd71   : > { %s2160_s13 = smov %s1792_s14  ;;  %s2161_s14 = smov %s1861_s21 }
 0xd72   : > { %s2162_s15 = smov %s1850_s18  ;;  %15 = sbr.rel (!%p13_p3) target bundleno = 3 (0x3), region = 68 }
 0xd79   :  { %1282 = vsyncpa [#allocation3], 1 }
 0xd7a   :  { %1284 = vsyncpa [#allocation3 + $0x1], 1 }

</bundles_post_ra>
